<compile_context>
chip_gen: v5e
topology: v5e:2x2
jax: 0.10.0
libtpu: 0.0.40
codegen_flags: <defaults>
</compile_context>

<pallas_src>
import functools

import jax
import jax.numpy as jnp
from jax.experimental import pallas as pl
from jax.experimental.pallas import tpu as pltpu

_MAX_BLOCK_BYTES = 2 * 1024 * 1024   # per-block budget; 4x (in+out, double-buffered) = 8 MiB
_MIN_PALLAS_BYTES = 256 * 1024       # below this, let XLA handle the transpose


def _transpose_kernel(x_ref, o_ref, *, ca, cb):
    # The axis swap happens on the VMEM-resident tile; tile shapes are chosen
    # so the result exactly matches the output block.
    o_ref[...] = jnp.swapaxes(x_ref[...], ca, cb)


def _divisors(n):
    small, large = [], []
    i = 1
    while i * i <= n:
        if n % i == 0:
            small.append(i)
            if i != n // i:
                large.append(n // i)
        i += 1
    return small + large[::-1]


def _fixed_arity(fn, n):
    # Give pallas_call index_maps an exact arity matching the grid rank.
    return {
        1: lambda a: fn(a),
        2: lambda a, b: fn(a, b),
        3: lambda a, b, c: fn(a, b, c),
        4: lambda a, b, c, d: fn(a, b, c, d),
        5: lambda a, b, c, d, e: fn(a, b, c, d, e),
    }[n]


def _pick_block_shape(shape, ca, cb, itemsize, max_block_bytes):
    """Choose per-axis block sizes (divisors of the extents) under a byte budget.

    Respects the (8,128) constraint for the last two dims of BOTH the input
    block and the (swapped) output block: such axes may only be tiled in
    multiples of 8 / 128, or kept at full extent.
    """
    nd = len(shape)
    perm = list(range(nd))
    perm[ca], perm[cb] = perm[cb], perm[ca]

    mult = [1] * nd
    for ax in (nd - 1, perm[nd - 1]):          # lands in a lane position (in or out)
        mult[ax] = max(mult[ax], 128)
    for ax in (nd - 2, perm[nd - 2]):          # lands in a sublane position (in or out)
        mult[ax] = max(mult[ax], 8)

    bs = list(shape)

    def nbytes():
        n = itemsize
        for v in bs:
            n *= v
        return n

    def shrink(ax, floor):
        if nbytes() <= max_block_bytes:
            return
        n = shape[ax]
        per_unit = nbytes() // bs[ax]
        desired = max(1, max_block_bytes // per_unit)
        lo = max(floor, mult[ax])
        best = None
        for d in _divisors(n):
            if d > desired:
                break
            if d >= lo and d % mult[ax] == 0:
                best = d
        if best is not None:
            bs[ax] = best

    # Shrink order: untouched leading/middle axes -> untouched lane axis
    # (kept >= 512 lanes at first for dense, contiguous stores) -> the swapped
    # axes themselves.  Second pass relaxes floors if still over budget.
    untouched = [ax for ax in range(nd) if ax not in (ca, cb)]
    order = [ax for ax in untouched if ax != nd - 1]
    if (nd - 1) not in (ca, cb):
        order.append(nd - 1)
    order += [ca, cb]

    for relax in (False, True):
        for ax in order:
            floor = mult[ax] if relax else (512 if mult[ax] >= 128 else mult[ax])
            shrink(ax, floor)

    return tuple(bs)


def pallas_transpose(x, dim0, dim1, *,
                     max_block_bytes=_MAX_BLOCK_BYTES,
                     min_pallas_bytes=_MIN_PALLAS_BYTES,
                     force_pallas=False):
    """Equivalent of torch.Tensor.transpose(dim0, dim1).contiguous()."""
    nd = x.ndim
    dim0 %= nd
    dim1 %= nd
    if dim0 == dim1:
        return x

    a, b = sorted((dim0, dim1))
    perm = list(range(nd))
    perm[a], perm[b] = perm[b], perm[a]
    out_shape = tuple(x.shape[p] for p in perm)

    itemsize = x.dtype.itemsize
    total_bytes = int(x.size) * itemsize
    if x.size == 0 or (not force_pallas and total_bytes < min_pallas_bytes):
        # Tiny tensor: pallas_call dispatch overhead > copy cost; let XLA fuse it.
        return jnp.swapaxes(x, a, b)

    # ---- Canonicalize: merge contiguous untouched axis runs (rank <= 5). ----
    groups = [tuple(range(0, a)), (a,), tuple(range(a + 1, b)), (b,),
              tuple(range(b + 1, nd))]

    def gsize(g):
        s = 1
        for d in g:
            s *= x.shape[d]
        return s

    sizes = [gsize(g) for g in groups]
    keep = [i for i in range(5) if i in (1, 3) or sizes[i] > 1]
    can_shape = tuple(sizes[i] for i in keep)
    ca, cb = keep.index(1), keep.index(3)
    ndc = len(can_shape)
    perm_c = list(range(ndc))
    perm_c[ca], perm_c[cb] = perm_c[cb], perm_c[ca]
    can_out_shape = tuple(can_shape[p] for p in perm_c)

    x_c = jnp.reshape(x, can_shape)

    # ---- Bandwidth-driven block sizes (and >=2 blocks when big enough). ----
    eff_max = min(max_block_bytes, max(total_bytes // 2, itemsize))
    bs = _pick_block_shape(can_shape, ca, cb, itemsize, eff_max)
    nblocks = [can_shape[d] // bs[d] for d in range(ndc)]
    grid_axes = tuple(d for d in range(ndc) if nblocks[d] > 1)

    if grid_axes:
        grid = tuple(nblocks[d] for d in grid_axes)
        dim_sems = ("parallel",) * len(grid)   # every block is independent
    else:
        grid = (1,)
        dim_sems = ("arbitrary",)

    in_block = tuple(bs)
    out_block = tuple(bs[perm_c[d]] for d in range(ndc))

    def _in_index(*gi):
        idx = [0] * ndc
        for g, d in zip(gi, grid_axes):
            idx[d] = g
        return tuple(idx)

    def _out_index(*gi):
        idx = _in_index(*gi)
        return tuple(idx[perm_c[d]] for d in range(ndc))

    in_index = _fixed_arity(_in_index, len(grid))
    out_index = _fixed_arity(_out_index, len(grid))

    block_bytes = itemsize
    for v in bs:
        block_bytes *= v
    resident = 4 * block_bytes            # in + out, double-buffered
    cp_kwargs = dict(dimension_semantics=dim_sems)
    if resident > 12 * 1024 * 1024:
        # Constraint-forced large blocks: raise the scoped-VMEM limit (rare).
        cp_kwargs["vmem_limit_bytes"] = int(min(resident * 5 // 4, 64 * 1024 * 1024))

    kernel = functools.partial(_transpose_kernel, ca=ca, cb=cb)

    out_c = pl.pallas_call(
        kernel,
        out_shape=jax.ShapeDtypeStruct(can_out_shape, x.dtype),
        grid=grid,
        in_specs=[pl.BlockSpec(in_block, in_index)],
        out_specs=pl.BlockSpec(out_block, out_index),
        compiler_params=pltpu.CompilerParams(**cp_kwargs),
        cost_estimate=pl.CostEstimate(flops=0, transcendentals=0,
                                      bytes_accessed=2 * total_bytes),
    )(x_c)

    return jnp.reshape(out_c, out_shape)


class TransposePallas:
    """Mirror of the PyTorch Transpose module (no parameters)."""

    def __init__(self, dim0, dim1):
        self.dim0 = dim0
        self.dim1 = dim1

    def __call__(self, x):
        return pallas_transpose(x, self.dim0, self.dim1)


if __name__ == "__main__":
    key = jax.random.PRNGKey(0)

    # NCHW input, as the PyTorch conv stack would feed it.
    x = jax.random.normal(key, (2, 4, 16, 16), dtype=jnp.float32)
    mod = TransposePallas(dim0=1, dim1=2)          # (N, C, H, W) -> (N, H, C, W)
    out = jax.block_until_ready(mod(x))
    ref = jnp.swapaxes(x, 1, 2)
    assert out.shape == ref.shape, (out.shape, ref.shape)
    assert out.dtype == ref.dtype, (out.dtype, ref.dtype)
    assert jnp.array_equal(out, ref)

    # Force the Pallas path on the tiny example to validate the kernel itself.
    out_forced = jax.block_until_ready(pallas_transpose(x, 1, 2, force_pallas=True))
    assert jnp.array_equal(out_forced, ref)

    # Larger input exercising the bandwidth-driven tiling
    # (grid over N and 512-wide lane tiles of W; multiple parallel steps).
    xb = jax.random.normal(key, (2, 16, 64, 1024), dtype=jnp.float32)   # 8 MiB
    outb = jax.block_until_ready(pallas_transpose(xb, 1, 2))
    assert jnp.array_equal(outb, jnp.swapaxes(xb, 1, 2))

    # Swap involving the leading axis (previously the whole-array fallback).
    outc = jax.block_until_ready(pallas_transpose(x, 0, 3, force_pallas=True))
    assert jnp.array_equal(outc, jnp.swapaxes(x, 0, 3))

    print("KERNEL_OK")
</pallas_src>

<mosaic_0001>
module attributes {stable_mosaic.version = 11 : i64} {
  func.func @_transpose_kernel(%arg0: i32, %arg1: memref<1x4x16x16xf32, #tpu.memory_space<vmem>>, %arg2: memref<1x16x4x16xf32, #tpu.memory_space<vmem>>) attributes {dimension_semantics = [#tpu.dimension_semantics<parallel>], iteration_bounds = array<i64: 2>, scalar_prefetch = 0 : i64, scratch_operands = 0 : i64, tpu.core_type = #tpu.core_type<tc>, window_params = [{transform_indices = @transform_0, window_bounds = array<i64: 1, 4, 16, 16>}, {transform_indices = @transform_1, window_bounds = array<i64: 1, 16, 4, 16>}]} {
    %c0 = arith.constant 0 : index
    %c0_0 = arith.constant 0 : index
    %c0_1 = arith.constant 0 : index
    %c0_2 = arith.constant 0 : index
    %0 = vector.load %arg1[%c0, %c0_0, %c0_1, %c0_2] : memref<1x4x16x16xf32, #tpu.memory_space<vmem>>, vector<1x4x16x16xf32>
    %1 = tpu.transpose %0, [0, 2, 1, 3] : vector<1x4x16x16xf32> -> vector<1x16x4x16xf32>
    %c0_3 = arith.constant 0 : index
    %c0_4 = arith.constant 0 : index
    %c0_5 = arith.constant 0 : index
    %c0_6 = arith.constant 0 : index
    %2 = vector.load %arg2[%c0_3, %c0_4, %c0_5, %c0_6] : memref<1x16x4x16xf32, #tpu.memory_space<vmem>>, vector<1x16x4x16xf32>
    tpu.vector_store %arg2[%c0_3, %c0_4, %c0_5, %c0_6], %1 {strides = array<i32>} : memref<1x16x4x16xf32, #tpu.memory_space<vmem>>, vector<1x16x4x16xf32>,
    return
  }
  func.func @transform_0(%arg0: i32) -> (i32, i32, i32, i32) {
    %c0_i32 = arith.constant 0 : i32
    %c0_i32_0 = arith.constant 0 : i32
    %c0_i32_1 = arith.constant 0 : i32
    %c0_i32_2 = arith.constant 0 : i32
    return %arg0, %c0_i32, %c0_i32_0, %c0_i32_1 : i32, i32, i32, i32
  }
  func.func @transform_1(%arg0: i32) -> (i32, i32, i32, i32) {
    %c0_i32 = arith.constant 0 : i32
    %c0_i32_0 = arith.constant 0 : i32
    %c0_i32_1 = arith.constant 0 : i32
    %c0_i32_2 = arith.constant 0 : i32
    return %arg0, %c0_i32, %c0_i32_0, %c0_i32_1 : i32, i32, i32, i32
  }
}

</mosaic_0001>

<bundles_post_ra>
// kernel: tpu_custom_call.1
= control target key start
LH: loop header
LB: loop body
LE: loop exit
PB: predicated region body
PF: predicated region fallthrough
CT: control target
= control target key end

     0   :  { %6 = vsyncpa [#allocation3], 0  ;;  %s736_s0 = inlined_call_operand.hbm [shape: f32[2,4,16,16], index: 0, kind: input, shape index: {}]   ;;  %s737_s1 = inlined_call_operand.hbm [shape: f32[2,16,4,16], index: 1, kind: output, shape index: {}]  }
   0x1   :  { %8 = vsyncpa [#allocation3 + $0x1], 0 }
   0x2   :  { %9 = vsyncpa [#allocation4], 0 }
   0x3   :  { %11 = vsyncpa [#allocation4 + $0x1], 0  ;;  %s546_s6 = smov 0   ;;  %s548_s7 = smov 0  }
   0x4   :  { %s550_s8 = smov 0   ;;  %s552_s9 = smov 0  }
   0x5 LB: > { %s567_s10 = sadd.s32 4294967295, %s528_s9   ;;  %s364_s11 = sadd.s32 4294967294, %s528_s9   ;;  %s528_s9 = sphi %s552_s9, %s747_s9   ;;  %s524_s8 = sphi %s550_s8, %s746_s8   ;;  %s520_s7 = sphi %s548_s7, %s745_s7   ;;  %s516_s6 = sphi %s546_s6, %s744_s6  }
   0x6   : > { %s571_s12 = sadd.s32 1, %s528_s9   ;;  %s24_s13 = sadd.s32 1, %s524_s8 }
   0x7   : > { %s21_s14 = ssub.s32 %s528_s9, %s571_s12  ;;  %p31_p0 = scmp.ne.s32.totalorder %s524_s8, %s520_s7 }
   0x8   : > { %p22_p1 = scmp.eq.s32.totalorder %s21_s14, 0  ;;  %p32_p2 = scmp.eq.s32.totalorder %s528_s9, 0 }
   0x9   : > { %p37_p3 = scmp.ne.s32.totalorder %s520_s7, %s516_s6  ;;  %p38_p4 = scmp.eq.s32.totalorder %s567_s10, 0 }
   0xa   : > { %s583_s15 = scalar_select %p22_p1, %s524_s8, %s24_s13  }
   0xb   : > { %p585_p5 = por %p32_p2, %p31_p0  ;;  %p589_p6 = por %p38_p4, %p37_p3 }
   0xc   : > { %p61_p7 = scmp.eq.s32.totalorder %s567_s10, 1  ;;  %p67_p8 = scmp.eq.s32.totalorder %s364_s11, 1 }
   0xd   : > { %p392_p10 = scmp.lt.s32.totalorder %s528_s9, 2  ;;  %s87_s20 = sand.u32 1, %s524_s8  }
   0xe   : > { %p596_p11 = por %p61_p7, %p31_p0  ;;  %p600_p12 = por %p67_p8, %p37_p3 }
   0xf   : > { %s378_s21 = sshll.u32 %s528_s9, 6  ;;  %s367_s22 = sshll.u32 %s87_s20, 6 }
  0x10   : > { %s96_s25 = scalar_lea.hbm %s736_s0, %s378_s21  ;;  %s91_s27 = scalar_lea.vmem [#allocation2], %s367_s22 }
  0x11   : > { %s97_s26 = sshll.u32 %s96_s25, 4  ;;  %s99_s28 = sshll.u32 %s91_s27, 4  ;;  %s98_s26 = int_to_ptr.hbm [resolvable:$true] %s97_s26  ;;  %s100_s28 = int_to_ptr.vmem [resolvable:$true] %s99_s28 }
  0x12   : > { %p611_p13 = pnand %p392_p10, %p585_p5  ;;  %p370_p0 = scmp.ge.s32.totalorder %s528_s9, 1 }
  0x13   : > { %p107_p1 = scmp.lt.s32.totalorder %s528_s9, 3  ;;  %s88_s30 = scalar_lea.sflag [#allocation3], %s87_s20 }
  0x14   : > { %s432_s2 = sshra.s32 %s98_s26, 4  ;;  %p436_p3 = pneg %p611_p13  ;;  %s433_s2 = int_to_ptr.hbm [resolvable:$true] %s432_s2 }
  0x15   : > { %s434_s3 = scalar_lea.hbm %s433_s2, 64  ;;  %s439_s11 = scalar_lea.hbm %s736_s0, 128 }
  0x16   : > { %p435_p2 = scmp.ne.s32.totalorder %s433_s2, %s434_s3  ;;  %p440_p5 = scmp.lt.s32.totalorder %s433_s2, %s736_s0 }
  0x17   : > { %p441_p8 = scmp.lt.s32.totalorder %s439_s11, %s434_s3 }
  0x18   : > { %p437_p4 = pnand %p436_p3, %p435_p2 }
  0x19   : > { %p442_p10 = por %p441_p8, %p440_p5 }
  0x1a   : > { %p438_p7 = pneg %p437_p4 }
  0x1c   : > { %p443_p9 = pnand %p442_p10, %p438_p7 }
  0x1e   : > { %446 = shalt.err (!%p443_p9)
}
  0x1f   : > { %s530_s16 = smov 128   ;;  %s531_s20 = smov 8  }
  0x20   : > { %387 = dma.hbm_to_vmem [thread:$0]  (!%p611_p13), %s98_s26, 1024, %s100_s28, %s88_s30, %s530_s16, %s530_s16, %s531_s20  }
  0x21   : > { %p108_p2 = pnand %p370_p0, %p107_p1 }
  0x22   : > { %s632_s21 = sand.u32 (!%p108_p2), 1, %s520_s7  }
  0x23   : > { %111 = sbr.rel (%p108_p2) target bundleno = 72 (0x48), region = 24  ;;  %s371_s22 = sshll.u32 (!%p108_p2), %s632_s21, 6 }
  0x24   : > { %s114_s23 = scalar_lea.sflag (!%p108_p2), [#allocation3], %s632_s21  ;;  %s117_s24 = scalar_lea.vmem (!%p108_p2), [#allocation2], %s371_s22 }
  0x28   : > { %507 = dma.done.wait (%p589_p6), %s114_s23, 1024  }
  0x29   : > { %509 = vsyncadd (%p589_p6), %s114_s23, 4294966272  ;;  %v532_v0 = vmov 1983009808   ;;  %v533_v2 = vmov 1934713408   ;;  %v137_v4 = vld [vmem:[%s117_s24] sm:$0xff] }
  0x2a   : > { %v151_v1 = vunpack.c.l.s4 %v532_v0  ;;  %v175_v3 = vunpack.c.l.s4 %v533_v2  ;;  %v139_v5 = vld [vmem:[%s117_s24 + $0x10] sm:$0xff]  ;;  %v141_v6 = vld [vmem:[%s117_s24 + $0x20] sm:$0xff]  ;;  %vm146_vm0 = vcmask 1047556   ;;  %vm258_vm1 = vcmask 125952   ;;  %v138_v12 = vld [vmem:[%s117_s24 + $0x8] sm:$0xff]  ;;  %s656_s17 = scalar_lea.vmem [#allocation5], %s371_s22 }
  0x2b   : > { %v143_v8 = vld [vmem:[%s117_s24 + $0x30] sm:$0xff]  ;;  %v145_v9 = vrot.slane %v141_v6, 4  ;;  %v148_v10 = vrot.slane %v137_v4, 4  ;;  %v160_v11 = vrot.slane %v139_v5, 4  ;;  %v140_v13 = vld [vmem:[%s117_s24 + $0x18] sm:$0xff]  ;;  %v142_v16 = vld [vmem:[%s117_s24 + $0x28] sm:$0xff] }
  0x2c   : > { %v152_v7 = vunpack.c.0.s8 %v151_v1  ;;  %v158_v14 = vrot.slane %v143_v8, 4  ;;  %v176_v15 = vunpack.c.0.s8 %v175_v3  ;;  %v144_v17 = vld [vmem:[%s117_s24 + $0x38] sm:$0xff]  ;;  %v204_v18 = vrot.slane %v138_v12, 4  ;;  %s379_s25 = sshll.u32 %s567_s10, 6  ;;  %s288_s28 = sshll.u32 %s656_s17, 4  ;;  %s289_s28 = int_to_ptr.vmem [resolvable:$true] %s288_s28 }
  0x2d   : > { %v216_v19 = vrot.slane %v140_v13, 4  ;;  %v147_v20 = vsel %vm146_vm0, %v145_v9, %v137_v4  ;;  %v149_v21 = vsel %vm146_vm0, %v141_v6, %v148_v10  ;;  %v161_v22 = vsel %vm146_vm0, %v143_v8, %v160_v11  ;;  %s287_s27 = scalar_lea.hbm %s737_s1, %s379_s25  ;;  %s276_s30 = scalar_lea.sflag [#allocation4], %s632_s21 }
  0x2e   : > { %v202_v23 = vrot.slane %v142_v16, 4  ;;  %v153_v24 = vperm.slane %v147_v20, %v152_v7  ;;  %v159_v25 = vsel %vm146_vm0, %v158_v14, %v139_v5  ;;  %v157_v26 = vperm.slane %v149_v21, %v152_v7  ;;  %s290_s29 = sshll.u32 %s287_s27, 4  ;;  %s482_s11 = scalar_lea.hbm %s737_s1, 128  ;;  %s291_s29 = int_to_ptr.hbm [resolvable:$true] %s290_s29 }
  0x2f   : > { %v169_v27 = vperm.slane %v161_v22, %v152_v7  ;;  %v165_v28 = vperm.slane %v159_v25, %v152_v7  ;;  %v214_v30 = vrot.slane %v144_v17, 4  ;;  %v205_v31 = vsel %vm146_vm0, %v142_v16, %v204_v18  ;;  %s476_s2 = sshra.s32 %s291_s29, 4  ;;  %s477_s2 = int_to_ptr.hbm [resolvable:$true] %s476_s2 }
  0x30   : > { %v203_v29 = vsel %vm146_vm0, %v202_v23, %v138_v12  ;;  %v172_v32 = vrot.slane %v153_v24, 4  ;;  %v184_v34 = vrot.slane %v157_v26, 4  ;;  %v213_v38 = vperm.slane %v205_v31, %v152_v7  ;;  %s478_s3 = scalar_lea.hbm %s477_s2, 64  ;;  %p483_p0 = scmp.lt.s32.totalorder %s477_s2, %s737_s1 }
  0x31   : > { %v182_v33 = vrot.slane %v169_v27, 4  ;;  %v209_v35 = vperm.slane %v203_v29, %v152_v7  ;;  %v170_v36 = vrot.slane %v165_v28, 4  ;;  %v215_v37 = vsel %vm146_vm0, %v214_v30, %v140_v13  ;;  %p479_p6 = scmp.ne.s32.totalorder %s477_s2, %s478_s3  ;;  %p484_p1 = scmp.lt.s32.totalorder %s482_s11, %s478_s3 }
  0x32   : > { %v217_v39 = vsel %vm146_vm0, %v144_v17, %v216_v19  ;;  %v173_v40 = vsel %vm146_vm0, %v165_v28, %v172_v32  ;;  %v185_v42 = vsel %vm146_vm0, %v169_v27, %v184_v34  ;;  %v221_v43 = vperm.slane %v215_v37, %v152_v7 }
  0x33   : > { %v183_v41 = vsel %vm146_vm0, %v182_v33, %v157_v26  ;;  %v171_v44 = vsel %vm146_vm0, %v170_v36, %v153_v24  ;;  %v181_v45 = vperm.slane %v173_v40, %v176_v15  ;;  %v193_v47 = vperm.slane %v185_v42, %v176_v15  ;;  %p480_p9 = pnand %p479_p6, %p596_p11  ;;  %p485_p3 = por %p484_p1, %p483_p0 }
  0x34   : > { %v189_v46 = vperm.slane %v183_v41, %v176_v15  ;;  %v177_v48 = vperm.slane %v171_v44, %v176_v15  ;;  %v226_v49 = vrot.slane %v221_v43, 4  ;;  %v228_v50 = vrot.slane %v209_v35, 4 }
  0x35   : > { %v225_v51 = vperm.slane %v217_v39, %v152_v7  ;;  %261 = vst.msk [vmem:[%s656_s17 + $0x8] sm:$0xf] %vm258_vm1, %v181_v45  ;;  %v196_v52 = vrot.slane %v181_v45, 4  ;;  %v200_v54 = vrot.slane %v193_v47, 4  ;;  %v240_v55 = vrot.slane %v213_v38, 4  ;;  %p481_p13 = pneg %p480_p9 }
  0x36   : > { %v198_v53 = vrot.slane %v189_v46, 4  ;;  %259 = vst.msk [vmem:[%s656_s17] sm:$0xf] %vm258_vm1, %v177_v48  ;;  %v194_v56 = vrot.slane %v177_v48, 4  ;;  %v227_v57 = vsel %vm146_vm0, %v226_v49, %v209_v35  ;;  %v229_v58 = vsel %vm146_vm0, %v221_v43, %v228_v50 }
  0x37   : > { %v238_v59 = vrot.slane %v225_v51, 4  ;;  %v197_v60 = vsel %vm146_vm0, 0.0, %v196_v52  ;;  %263 = vst.msk [vmem:[%s656_s17 + $0x10] sm:$0xf] %vm258_vm1, %v189_v46  ;;  %v233_v62 = vperm.slane %v227_v57, %v176_v15  ;;  %v237_v0 = vperm.slane %v229_v58, %v176_v15  ;;  %p486_p4 = pnand %p485_p3, %p481_p13 }
  0x38   : > { %v199_v61 = vsel %vm146_vm0, 0.0, %v198_v53  ;;  %v195_v63 = vsel %vm146_vm0, 0.0, %v194_v56  ;;  %262 = vst.msk [vmem:[%s656_s17 + $0xc] sm:$0xf] %vm258_vm1, %v197_v60  ;;  %v241_v2 = vsel %vm146_vm0, %v225_v51, %v240_v55  ;;  %v201_v3 = vsel %vm146_vm0, 0.0, %v200_v54 }
  0x39   : > { %v239_v1 = vsel %vm146_vm0, %v238_v59, %v213_v38  ;;  %260 = vst.msk [vmem:[%s656_s17 + $0x4] sm:$0xf] %vm258_vm1, %v195_v63  ;;  %v250_v4 = vrot.slane %v233_v62, 4  ;;  %v249_v6 = vperm.slane %v241_v2, %v176_v15  ;;  %v252_v7 = vrot.slane %v237_v0, 4 }
  0x3a   : > { %v245_v5 = vperm.slane %v239_v1, %v176_v15  ;;  %264 = vst.msk [vmem:[%s656_s17 + $0x14] sm:$0xf] %vm258_vm1, %v199_v61 }
  0x3b   : > { %265 = vst.msk [vmem:[%s656_s17 + $0x18] sm:$0xf] %vm258_vm1, %v193_v47  ;;  %v251_v8 = vsel %vm146_vm0, 0.0, %v250_v4  ;;  %v253_v10 = vsel %vm146_vm0, 0.0, %v252_v7  ;;  %v256_v11 = vrot.slane %v249_v6, 4 }
  0x3c   : > { %v254_v9 = vrot.slane %v245_v5, 4  ;;  %266 = vst.msk [vmem:[%s656_s17 + $0x1c] sm:$0xf] %vm258_vm1, %v201_v3 }
  0x3d   : > { %267 = vst.msk [vmem:[%s656_s17 + $0x20] sm:$0xf] %vm258_vm1, %v233_v62  ;;  %v257_v13 = vsel %vm146_vm0, 0.0, %v256_v11 }
  0x3e   : > { %268 = vst.msk [vmem:[%s656_s17 + $0x24] sm:$0xf] %vm258_vm1, %v251_v8  ;;  %v255_v12 = vsel %vm146_vm0, 0.0, %v254_v9 }
  0x3f   : > { %269 = vst.msk [vmem:[%s656_s17 + $0x28] sm:$0xf] %vm258_vm1, %v237_v0 }
  0x40   : > { %270 = vst.msk [vmem:[%s656_s17 + $0x2c] sm:$0xf] %vm258_vm1, %v253_v10 }
  0x41   : > { %271 = vst.msk [vmem:[%s656_s17 + $0x30] sm:$0xf] %vm258_vm1, %v245_v5 }
  0x42   : > { %272 = vst.msk [vmem:[%s656_s17 + $0x34] sm:$0xf] %vm258_vm1, %v255_v12 }
  0x43   : > { %273 = vst.msk [vmem:[%s656_s17 + $0x38] sm:$0xf] %vm258_vm1, %v249_v6 }
  0x44   : > { %274 = vst.msk [vmem:[%s656_s17 + $0x3c] sm:$0xf] %vm258_vm1, %v257_v13 }
  0x45   : > { %489 = shalt.err (!%p486_p4)
}
  0x46   : > { %s534_s16 = smov 64   ;;  %s535_s20 = smov 4  }
  0x47   : > { %382 = dma.vmem_to_hbm [thread:$0]  (%p596_p11), %s289_s28, 1024, %s291_s29, %s276_s30, %s534_s16, %s534_s16, %s535_s20  }
  0x48 PF: > { %s305_s21 = sand.u32 1, %s516_s6   ;;  %p743_p7 = scmp.ge.s32.totalorder %s528_s9, 2 }
  0x49   : > { %s306_s22 = scalar_lea.sflag [#allocation4], %s305_s21 }
  0x4a   : > { %p389_p5 = pnand %p743_p7, %p600_p12 }
  0x4c   : > { %p390_p8 = pneg %p389_p5 }
  0x4e   : > { %511 = dma.done.wait (%p390_p8), %s306_s22, 1024  }
  0x4f   : > { %513 = vsyncadd (%p390_p8), %s306_s22, 4294966272  ;;  %p14_p10 = scmp.ge.s32.totalorder %s571_s12, 4   ;;  %s744_s6 = smov %s520_s7 }
  0x50   : > { %s745_s7 = smov %s524_s8  ;;  %s746_s8 = smov %s583_s15 }
  0x51   : > { %s747_s9 = smov %s571_s12  ;;  %16 = sbr.rel (!%p14_p10) target bundleno = 5 (0x5), region = 69 }
  0x56   :  { %312 = vsyncpa [#allocation3], 1 }
  0x57   :  { %314 = vsyncpa [#allocation3 + $0x1], 1 }
  0x58   :  { %315 = vsyncpa [#allocation4], 1 }
  0x59   :  { %317 = vsyncpa [#allocation4 + $0x1], 1 }

</bundles_post_ra>
